<compile_context>
chip_gen: v6e
topology: v6e:2x2x1
jax: 0.10.0
libtpu: 0.0.40
codegen_flags: <defaults>
</compile_context>

<pallas_src>
import math
import functools

import jax
import jax.numpy as jnp
from jax import lax
from jax.experimental import pallas as pl
from jax.experimental.pallas import tpu as pltpu


def _round_up(x: int, m: int) -> int:
    return ((x + m - 1) // m) * m


def _embed_gather_kernel(ids_ref, emb_hbm, out_ref, gather_buf, copy_sem, *,
                         tm: int, scale: float):
    """Gather `tm` embedding rows for this grid step and write a dense tile.

    ids_ref:    SMEM scalar-prefetch ref, (N_pad,) int32 token ids
    emb_hbm:    raw HBM ref, (V, D) embedding table (memory_space=pl.ANY)
    out_ref:    (tm, D) VMEM output tile
    gather_buf: (tm, D) VMEM scratch the row DMAs land in
    copy_sem:   single DMA semaphore shared by all `tm` row copies
    """
    step = pl.program_id(0)
    base = step * tm

    # Issue all `tm` row copies up front so they are in flight concurrently
    # (many outstanding small DMAs -> amortized latency, better HBM use).
    def issue(r, carry):
        tok = ids_ref[base + r]
        pltpu.make_async_copy(emb_hbm.at[tok], gather_buf.at[r], copy_sem).start()
        return carry

    lax.fori_loop(0, tm, issue, 0)

    # Drain: each wait accounts for one row-sized transfer on the shared
    # semaphore; after `tm` waits every row has landed.
    def drain(r, carry):
        pltpu.make_async_copy(emb_hbm.at[0], gather_buf.at[r], copy_sem).wait()
        return carry

    lax.fori_loop(0, tm, drain, 0)

    # One dense (tm, D) scaled store (lane/sublane aligned, unmasked).
    out_ref[...] = gather_buf[...] * jnp.asarray(scale, out_ref.dtype)


def input_embeddings(token_ids: jax.Array, embedding_table: jax.Array, *,
                     block_tokens: int = 256) -> jax.Array:
    """token_ids: (B, S) int, embedding_table: (V, D) -> (B, S, D)."""
    B, S = token_ids.shape
    V, D = embedding_table.shape
    N = B * S

    # Tokens per grid step: multiple of 8 (sublane dense), clamped so tiny
    # inputs don't allocate a huge mostly-padded tile.
    tm = min(block_tokens, _round_up(N, 8))
    tm = _round_up(tm, 8)
    n_pad = _round_up(N, tm)
    num_tiles = n_pad // tm

    ids_flat = token_ids.reshape(N).astype(jnp.int32)
    if n_pad != N:
        ids_flat = jnp.pad(ids_flat, (0, n_pad - N))  # pad with token 0; sliced off below

    scale = math.sqrt(float(D))
    kernel = functools.partial(_embed_gather_kernel, tm=tm, scale=scale)

    # VMEM budget: gather scratch + double-buffered output tile (+ slack).
    tile_bytes = tm * D * embedding_table.dtype.itemsize
    vmem_limit = int(min(100 * 2**20, max(32 * 2**20, 6 * tile_bytes)))

    out_flat = pl.pallas_call(
        kernel,
        out_shape=jax.ShapeDtypeStruct((n_pad, D), embedding_table.dtype),
        grid_spec=pltpu.PrefetchScalarGridSpec(
            num_scalar_prefetch=1,          # ids -> SMEM
            grid=(num_tiles,),
            in_specs=[pl.BlockSpec(memory_space=pl.ANY)],   # table stays in HBM
            out_specs=pl.BlockSpec((tm, D), lambda i, ids: (i, 0)),
            scratch_shapes=[
                pltpu.VMEM((tm, D), embedding_table.dtype),  # gather landing buffer
                pltpu.SemaphoreType.DMA,                     # shared DMA semaphore
            ],
        ),
        compiler_params=pltpu.CompilerParams(
            dimension_semantics=("parallel",),   # steps independent -> megacore-safe
            vmem_limit_bytes=vmem_limit,
        ),
    )(ids_flat, embedding_table)

    return out_flat[:N].reshape(B, S, D)


if __name__ == "__main__":
    # Small, deterministic setup consistent with the module's __init__.
    d_model = 128
    vocab_size = 64
    batch = 2
    seq = 8

    key = jax.random.PRNGKey(0)
    k_emb, k_ids = jax.random.split(key)

    # Deterministic "parameters" (nn.Embedding weight ~ N(0, 1) by default).
    embedding_table = jax.random.normal(k_emb, (vocab_size, d_model), dtype=jnp.float32)
    # Deterministic example input token ids.
    token_ids = jax.random.randint(k_ids, (batch, seq), 0, vocab_size, dtype=jnp.int32)

    ref = jnp.take(embedding_table, token_ids, axis=0) * math.sqrt(float(d_model))

    # Default block size (single grid step for this small input).
    out = input_embeddings(token_ids, embedding_table)
    out = jax.block_until_ready(out)
    assert out.shape == (batch, seq, d_model)
    assert jnp.allclose(out, ref, atol=1e-6, rtol=1e-6)

    # Small block size to also exercise the multi-grid-step path.
    out2 = input_embeddings(token_ids, embedding_table, block_tokens=8)
    out2 = jax.block_until_ready(out2)
    assert jnp.allclose(out2, ref, atol=1e-6, rtol=1e-6)

    print("KERNEL_OK")
</pallas_src>

<mosaic_0001>
module attributes {stable_mosaic.version = 11 : i64} {
  func.func @_embed_gather_kernel(%arg0: i32, %arg1: memref<16xi32, #tpu.memory_space<smem>>, %arg2: memref<64x128xf32, #tpu.memory_space<any>>, %arg3: memref<16x128xf32, #tpu.memory_space<vmem>>, %arg4: memref<16x128xf32, #tpu.memory_space<vmem>>, %arg5: memref<!tpu.dma_semaphore, #tpu.memory_space<semaphore_mem>>) attributes {dimension_semantics = [#tpu.dimension_semantics<parallel>], iteration_bounds = array<i64: 1>, scalar_prefetch = 1 : i64, scratch_operands = 2 : i64, tpu.core_type = #tpu.core_type<tc>, window_params = [{}, {transform_indices = @transform_1, window_bounds = array<i64: 16, 128>}]} {
    %c16_i32 = arith.constant 16 : i32
    %0 = arith.muli %arg0, %c16_i32 : i32
    %c0_i32 = arith.constant 0 : i32
    %c16_i32_0 = arith.constant 16 : i32
    %1 = arith.addi %c0_i32, %c16_i32_0 : i32
    %c1_i32 = arith.constant 1 : i32
    scf.for %arg6 = %c0_i32 to %1 step %c1_i32  : i32 {
      %7 = arith.addi %0, %arg6 : i32
      %8 = arith.index_cast %7 : i32 to index
      %9 = memref.load %arg1[%8] : memref<16xi32, #tpu.memory_space<smem>>
      %c0_i32_9 = arith.constant 0 : i32
      %10 = tpu.memref_slice %arg2[%9, %c0_i32_9] : memref<64x128xf32, #tpu.memory_space<any>> -> memref<1x128xf32, #tpu.memory_space<any>>
      %11 = tpu.memref_squeeze %10 : memref<1x128xf32, #tpu.memory_space<any>> -> memref<128xf32, #tpu.memory_space<any>>
      %c0_i32_10 = arith.constant 0 : i32
      %12 = tpu.memref_slice %arg4[%arg6, %c0_i32_10] : memref<16x128xf32, #tpu.memory_space<vmem>> -> memref<1x128xf32, #tpu.memory_space<vmem>>
      %13 = tpu.memref_squeeze %12 : memref<1x128xf32, #tpu.memory_space<vmem>> -> memref<128xf32, #tpu.memory_space<vmem>>
      tpu.enqueue_dma source(%11 : memref<128xf32, #tpu.memory_space<any>>) target(%13 : memref<128xf32, #tpu.memory_space<vmem>>) target_semaphore(%arg5 : memref<!tpu.dma_semaphore, #tpu.memory_space<semaphore_mem>>)
    }
    %c16_i32_1 = arith.constant 16 : i32
    %c0_i32_2 = arith.constant 0 : i32
    %c16_i32_3 = arith.constant 16 : i32
    %2 = arith.addi %c0_i32_2, %c16_i32_3 : i32
    %c1_i32_4 = arith.constant 1 : i32
    scf.for %arg6 = %c0_i32_2 to %2 step %c1_i32_4  : i32 {
      %c0_i32_9 = arith.constant 0 : i32
      %c0_i32_10 = arith.constant 0 : i32
      %7 = tpu.memref_slice %arg2[%c0_i32_9, %c0_i32_10] : memref<64x128xf32, #tpu.memory_space<any>> -> memref<1x128xf32, #tpu.memory_space<any>>
      %8 = tpu.memref_squeeze %7 : memref<1x128xf32, #tpu.memory_space<any>> -> memref<128xf32, #tpu.memory_space<any>>
      %c0_i32_11 = arith.constant 0 : i32
      %9 = tpu.memref_slice %arg4[%arg6, %c0_i32_11] : memref<16x128xf32, #tpu.memory_space<vmem>> -> memref<1x128xf32, #tpu.memory_space<vmem>>
      %10 = tpu.memref_squeeze %9 : memref<1x128xf32, #tpu.memory_space<vmem>> -> memref<128xf32, #tpu.memory_space<vmem>>
      tpu.wait_dma2 semaphore(%arg5 : memref<!tpu.dma_semaphore, #tpu.memory_space<semaphore_mem>>) src(%8 : memref<128xf32, #tpu.memory_space<any>>) dst(%10 : memref<128xf32, #tpu.memory_space<vmem>>)
    }
    %c16_i32_5 = arith.constant 16 : i32
    %c0 = arith.constant 0 : index
    %c0_6 = arith.constant 0 : index
    %3 = vector.load %arg4[%c0, %c0_6] : memref<16x128xf32, #tpu.memory_space<vmem>>, vector<16x128xf32>
    %cst = arith.constant 11.3137083 : f32
    %4 = vector.broadcast %cst : f32 to vector<16x128xf32>
    %5 = arith.mulf %3, %4 : vector<16x128xf32>
    %c0_7 = arith.constant 0 : index
    %c0_8 = arith.constant 0 : index
    %6 = vector.load %arg3[%c0_7, %c0_8] : memref<16x128xf32, #tpu.memory_space<vmem>>, vector<16x128xf32>
    tpu.vector_store %arg3[%c0_7, %c0_8], %5 {strides = array<i32>} : memref<16x128xf32, #tpu.memory_space<vmem>>, vector<16x128xf32>,
    return
  }
  func.func @transform_1(%arg0: i32, %arg1: memref<16xi32, #tpu.memory_space<smem>>) -> (i32, i32) {
    %c0_i32 = arith.constant 0 : i32
    %c0_i32_0 = arith.constant 0 : i32
    return %arg0, %c0_i32 : i32, i32
  }
}

</mosaic_0001>

<bundles_post_ra>
// kernel: tpu_custom_call.1
= control target key start
LH: loop header
LB: loop body
LE: loop exit
PB: predicated region body
PF: predicated region fallthrough
CT: control target
= control target key end

     0   :  { %s178_s9 = smov [#allocation5]   ;;  %s223_s0 = inlined_call_operand.hbm [shape: s32[16], index: 0, kind: input, shape index: {}]   ;;  %s224_s1 = inlined_call_operand.hbm [shape: f32[64,128], index: 1, kind: input, shape index: {}]   ;;  %s225_s2 = inlined_call_operand.hbm [shape: f32[16,128], index: 2, kind: output, shape index: {}]  }
   0x1   :  { %8 = dma.hbm_to_smem %s223_s0, 16, %s178_s9, [#allocation4] }
   0x2   :  { %164 = dma.done.wait [#allocation4], 16 }
   0x3   :  { %165 = vsyncadd [#allocation4], 4294967280 }
   0x4   :  { %10 = sfence }
   0x5   :  { %11 = vsyncpa [#allocation7], 0  ;;  %s201_s12 = smov 0  }
   0x6 LB: > { %s20_s13 = sld [smem:[#allocation5 + %s172_s12]]  ;;  %s23_s14 = scalar_lea.vmem [#allocation2], %s172_s12  ;;  %s172_s12 = sphi %s201_s12, %s18_s12  }
   0x7   : > { %s31_s15 = sshll.u32 %s23_s14, 4  ;;  %s116_s22 = scalar_lea.hbm %s224_s1, 1024  ;;  %s32_s15 = int_to_ptr.vmem [resolvable:$true] %s31_s15 }
   0xc   : > { %s84_s16 = sshll.u32 %s20_s13, 4 }
   0xd   : > { %s22_s18 = scalar_lea.hbm %s224_s1, %s84_s16 }
   0xe   : > { %s114_s19 = scalar_lea.hbm %s22_s18, 16  ;;  %p117_p1 = scmp.lt.s32.totalorder %s22_s18, %s224_s1 }
   0xf   : > { %p115_p0 = scmp.ne.s32.totalorder %s22_s18, %s114_s19  ;;  %p118_p2 = scmp.lt.s32.totalorder %s116_s22, %s114_s19 }
  0x11   : > { %p119_p3 = por %p118_p2, %p117_p1 }
  0x13   : > { %p120_p4 = pnand %p119_p3, %p115_p0 }
  0x15   : > { %123 = shalt.err (!%p120_p4)  }
  0x16   : > { %s124_s25 = scalar_lea.vmem %s32_s15, 16  ;;  %s179_s26 = smov [#allocation2]  }
  0x17   : > { %p125_p5 = scmp.ne.s32.totalorder %s32_s15, %s124_s25  ;;  %s126_s27 = sshll.u32 %s179_s26, 4  ;;  %s127_s27 = int_to_ptr.vmem [resolvable:$false] %s126_s27 }
  0x18   : > { %s128_s28 = scalar_lea.vmem %s127_s27, 256  ;;  %p129_p6 = scmp.lt.s32.totalorder %s32_s15, %s127_s27 }
  0x19   : > { %p130_p7 = scmp.lt.s32.totalorder %s128_s28, %s124_s25 }
  0x1b   : > { %p131_p8 = por %p130_p7, %p129_p6 }
  0x1d   : > { %p132_p9 = pnand %p131_p8, %p125_p5 }
  0x1f   : > { %135 = shalt.err (!%p132_p9)  }
  0x20   : > { %34 = dma.hbm_to_vmem [thread:$0]  %s22_s18, 16, %s32_s15, [#allocation3] }
  0x21   : > { %s18_s12 = sadd.s32 1, %s172_s12  }
  0x22   : > { %p15_p10 = scmp.ge.s32.totalorder %s18_s12, 16  }
  0x23   :  { %s174_s29 = smov (%p15_p10), 0  }
  0x24   :  { %17 = sbr.rel (!%p15_p10) target bundleno = 6 (0x6), region = 40 }
  0x29 LB: > { %166 = dma.done.wait [#allocation3], 16  ;;  %s176_s29 = sphi %s174_s29, %s40_s29  }
  0x2a   : > { %167 = vsyncadd [#allocation3], 4294967280  ;;  %s40_s29 = sadd.s32 1, %s176_s29  }
  0x2b   : > { %p37_p11 = scmp.ge.s32.totalorder %s40_s29, 16  }
  0x2c   :  { %v43_v0 = vld [vmem:[#allocation2] sm:$0xff] (%p37_p11)  ;;  %v44_v1 = vld [vmem:[#allocation2 + $0x8] sm:$0xff] (%p37_p11)  ;;  %s180_s30 = smov (%p37_p11), [#allocation6]  }
  0x2d   :  { %39 = sbr.rel (!%p37_p11) target bundleno = 41 (0x29), region = 51  ;;  %v45_v2 = vmul.f32 (%p37_p11), 11.313708, %v43_v0  ;;  %v46_v3 = vmul.f32 (%p37_p11), 11.313708, %v44_v1  ;;  %s54_s3 = sshll.u32 (%p37_p11), %s180_s30, 4  ;;  %s55_s3 = int_to_ptr.vmem [resolvable:$true] %s54_s3 }
  0x2e   :  { %s136_s4 = scalar_lea.vmem (%p37_p11), %s55_s3, 256  ;;  %p141_p13 = scmp.lt.s32.totalorder (%p37_p11), %s55_s3, %s55_s3 }
  0x2f   :  { %47 = vst [vmem:[#allocation6] sm:$0xff] (%p37_p11), %v45_v2  ;;  %48 = vst [vmem:[#allocation6 + $0x8] sm:$0xff] (%p37_p11), %v46_v3  ;;  %p137_p12 = scmp.ne.s32.totalorder (%p37_p11), %s55_s3, %s136_s4  ;;  %p142_p0 = scmp.lt.s32.totalorder (%p37_p11), %s136_s4, %s136_s4 }
  0x31   :  { %p143_p1 = por (%p37_p11), %p142_p0, %p141_p13 }
  0x33   :  { %p144_p2 = pnand %p143_p1, %p137_p12 }
  0x35   :  { %147 = shalt.err (!%p144_p2)
}
  0x36   :  { %s181_s1 = smov 128   ;;  %s182_s5 = smov 8  }
  0x37   :  { %60 = dma.vmem_to_hbm [thread:$0]  %s55_s3, 256, %s225_s2, [#allocation7], %s181_s1, %s181_s1, %s182_s5  }
  0x38   :  { %168 = dma.done.wait [#allocation7], 256  }
  0x39   :  { %169 = vsyncadd [#allocation7], 4294967040 }
  0x3a   :  { %64 = vsyncpa [#allocation7], 1 }
  0x3b   :  { %65 = vsyncmov [#allocation3] }
  0x3e   :  { %s66_s8 = vpop.sfrf %65 }
  0x3f   :  { %p85_p3 = scmp.ne.s32.totalorder %s66_s8, 0 }
  0x41   :  { %70 = shalt.err (%p85_p3)  }

</bundles_post_ra>
